<compile_context>
chip_gen: v5e
topology: v5e:2x2
jax: 0.10.0
libtpu: 0.0.40
codegen_flags: <defaults>
</compile_context>

<pallas_src>
import functools
import math

import jax
import jax.numpy as jnp
from jax.experimental import pallas as pl
from jax.experimental.pallas import tpu as pltpu


def _make_pe(max_len: int, d_model: int) -> jnp.ndarray:
    """Deterministic positional-encoding buffer, identical to the torch __init__."""
    assert d_model % 2 == 0, "d_model must be even (same limitation as the torch original)"
    position = jnp.arange(0, max_len, dtype=jnp.float32)[:, None]            # [max_len, 1]
    div_term = jnp.exp(
        jnp.arange(0, d_model, 2, dtype=jnp.float32) * (-math.log(10000.0) / d_model)
    )                                                                         # [d_model//2]
    pe = jnp.zeros((max_len, d_model), dtype=jnp.float32)
    pe = pe.at[:, 0::2].set(jnp.sin(position * div_term))
    pe = pe.at[:, 1::2].set(jnp.cos(position * div_term))
    return pe                                                                 # [max_len, D]


def _pe_kernel(seed_ref, x_ref, pe_ref, o_ref, *, p_drop: float, apply_dropout: bool):
    # x_ref / o_ref: (bt, ts, Dp); pe_ref: (ts, Dp) — broadcasts over the batch block.
    val = x_ref[...] + pe_ref[...]

    if apply_dropout and p_drop >= 1.0:
        # Degenerate case: drop everything (avoids 1/(1-p) division by zero).
        val = jnp.zeros_like(val)
    elif apply_dropout and p_drop > 0.0:
        s_tile = pl.program_id(0)
        b_tile = pl.program_id(1)
        # Mix (user seed, batch-block index, seq-tile index) into the HW PRNG so
        # every grid step gets an independent random stream.
        pltpu.prng_seed(seed_ref[0], b_tile, s_tile)
        bits = pltpu.bitcast(pltpu.prng_random_bits(val.shape), jnp.uint32)
        # Integer threshold compare: P(keep) = 1 - p_drop, single where+mul.
        thresh = jnp.uint32(min(int(p_drop * (1 << 32)), (1 << 32) - 1))
        keep = bits >= thresh
        val = jnp.where(keep, val * (1.0 / (1.0 - p_drop)), 0.0)
        # TODO(synk): validate keep-rate / mean preservation of this HW-PRNG
        # dropout path on real hardware (no interpret-mode lowering exists).

    o_ref[...] = val.astype(o_ref.dtype)


def positional_encoding(x, pe_buf, *, p_drop=0.1, training=False, seed=0):
    """x: [B, S, D].  pe_buf: [max_len, D].  Returns [B, S, D]."""
    B, S, D = x.shape
    max_len, d_model = pe_buf.shape
    assert d_model == D, "pe buffer last dim must equal d_model"
    assert S <= max_len, "sequence length exceeds max_len of the pe buffer"
    orig_dtype = x.dtype
    pe_slice = pe_buf[:S, :].astype(orig_dtype)     # like pe[:, :x.size(1), :]

    # --- lane-dense fold: k = 128 // gcd(D, 128) rows into the lane axis -------
    fold = 1
    if D % 128 != 0:
        k = 128 // math.gcd(D, 128)
        if k > 1 and S % k == 0:
            fold = k
    Sp, Dp = S // fold, D * fold
    xr = x.reshape(B, Sp, Dp)
    per = pe_slice.reshape(Sp, Dp)                  # same fold -> add stays consistent

    itemsize = jnp.dtype(orig_dtype).itemsize
    sub = max(8, 32 // itemsize)                    # dtype-correct sublane multiple

    # --- generation-aware byte budgets -----------------------------------------
    try:
        vmem_cap = int(pltpu.get_tpu_info().vmem_capacity_bytes)
    except Exception:
        vmem_cap = 64 * 1024 * 1024                 # unknown -> assume smallest (v7x)
    if vmem_cap >= 100 * 1024 * 1024:               # v5e / v6e: 128 MiB physical
        per_tile_budget = 10 * 1024 * 1024
        scoped_cap = 64 * 1024 * 1024
    else:                                           # v7x: 64 MiB physical
        per_tile_budget = 4 * 1024 * 1024
        scoped_cap = 32 * 1024 * 1024
    target_bytes = min(4 * 1024 * 1024, per_tile_budget)   # amortize ~0.35us/step

    row_bytes = Dp * itemsize

    # --- sequence tile: as many rows as the per-tile budget allows (no fixed
    #     1024-row cap); round to the dtype sublane multiple when tiled ---------
    ts = min(Sp, max(sub, per_tile_budget // max(1, row_bytes)))
    if ts < Sp:
        ts = max(sub, (ts // sub) * sub)
    num_s = pl.cdiv(Sp, ts)

    # --- batch-blocking: fold batch elements into a grid step so per-step bytes
    #     reach the target even for small S*D -----------------------------------
    per_elem_bytes = ts * row_bytes
    bt = 1
    if B > 1 and per_elem_bytes < target_bytes:
        bt = min(
            B,
            max(1, per_tile_budget // max(1, per_elem_bytes)),
            max(1, -(-target_bytes // max(1, per_elem_bytes))),   # ceil-div
        )
    num_b = pl.cdiv(B, bt)

    # Scoped-VMEM budget: x + out double-buffered (4 tiles) + pe double-buffered.
    tile_bytes = bt * per_elem_bytes
    pe_bytes = ts * row_bytes
    vmem_need = 4 * tile_bytes + 2 * pe_bytes + (2 << 20)
    vmem_limit = int(min(scoped_cap, max(vmem_need, 16 * 1024 * 1024)))

    seed_arr = jnp.array([seed], dtype=jnp.int32)   # scalar-prefetch seed (SMEM)
    kernel = functools.partial(_pe_kernel, p_drop=float(p_drop),
                               apply_dropout=bool(training))

    out = pl.pallas_call(
        kernel,
        out_shape=jax.ShapeDtypeStruct((B, Sp, Dp), orig_dtype),
        grid_spec=pltpu.PrefetchScalarGridSpec(
            num_scalar_prefetch=1,
            # Seq-tile axis OUTERMOST: the pe block index only changes with the
            # seq tile, so Pallas re-uses the resident pe tile across the inner
            # batch axis instead of re-DMAing it every step.  (When ts == Sp the
            # pe tile is DMA'd exactly once for the whole kernel, which subsumes
            # the "pe fully resident" optimization.)
            grid=(num_s, num_b),
            in_specs=[
                pl.BlockSpec((bt, ts, Dp), lambda s, b, seed_r: (b, s, 0)),   # x
                pl.BlockSpec((ts, Dp), lambda s, b, seed_r: (s, 0)),          # pe
            ],
            out_specs=pl.BlockSpec((bt, ts, Dp), lambda s, b, seed_r: (b, s, 0)),
        ),
        compiler_params=pltpu.CompilerParams(
            dimension_semantics=("parallel", "parallel"),
            vmem_limit_bytes=vmem_limit,
        ),
    )(seed_arr, xr, per)

    return out.reshape(B, S, D)


if __name__ == "__main__":
    key = jax.random.PRNGKey(0)

    # Small shapes consistent with the module: batch=2, seq=8, d_model=32.
    B, S, D = 2, 8, 32
    MAX_LEN = 64
    x = jax.random.normal(key, (B, S, D), dtype=jnp.float32)
    pe_buf = _make_pe(MAX_LEN, D)

    # Eval mode (dropout = identity) — deterministic, check against reference.
    out = positional_encoding(x, pe_buf, p_drop=0.1, training=False)
    out = jax.block_until_ready(out)
    ref = x + pe_buf[None, :S, :]
    assert out.shape == (B, S, D)
    assert jnp.allclose(out, ref, atol=1e-6), "mismatch vs reference (D=32)"

    # Second tiny check exercising the generalized lane-dense fold (D=48 -> fold 8).
    B2, S2, D2 = 2, 16, 48
    x2 = jax.random.normal(jax.random.PRNGKey(1), (B2, S2, D2), dtype=jnp.float32)
    pe_buf2 = _make_pe(MAX_LEN, D2)
    out2 = jax.block_until_ready(
        positional_encoding(x2, pe_buf2, p_drop=0.1, training=False))
    ref2 = x2 + pe_buf2[None, :S2, :]
    assert jnp.allclose(out2, ref2, atol=1e-6), "mismatch vs reference (D=48)"

    # NOTE: the training=True path uses the TPU hardware PRNG (pltpu.prng_*),
    # which has no CPU/interpret lowering, so it is intentionally not exercised
    # in this smoke test.
    print("KERNEL_OK")
</pallas_src>

<mosaic_0001>
module attributes {stable_mosaic.version = 11 : i64} {
  func.func @_pe_kernel(%arg0: i32, %arg1: i32, %arg2: memref<1xi32, #tpu.memory_space<smem>>, %arg3: memref<2x2x128xf32, #tpu.memory_space<vmem>>, %arg4: memref<2x128xf32, #tpu.memory_space<vmem>>, %arg5: memref<2x2x128xf32, #tpu.memory_space<vmem>>) attributes {dimension_semantics = [#tpu.dimension_semantics<parallel>, #tpu.dimension_semantics<parallel>], iteration_bounds = array<i64: 1, 1>, scalar_prefetch = 1 : i64, scratch_operands = 0 : i64, tpu.core_type = #tpu.core_type<tc>, window_params = [{transform_indices = @transform_0, window_bounds = array<i64: 2, 2, 128>}, {transform_indices = @transform_1, window_bounds = array<i64: 2, 128>}, {transform_indices = @transform_2, window_bounds = array<i64: 2, 2, 128>}]} {
    %c0 = arith.constant 0 : index
    %c0_0 = arith.constant 0 : index
    %c0_1 = arith.constant 0 : index
    %0 = vector.load %arg3[%c0, %c0_0, %c0_1] : memref<2x2x128xf32, #tpu.memory_space<vmem>>, vector<2x2x128xf32>
    %c0_2 = arith.constant 0 : index
    %c0_3 = arith.constant 0 : index
    %1 = vector.load %arg4[%c0_2, %c0_3] : memref<2x128xf32, #tpu.memory_space<vmem>>, vector<2x128xf32>
    %2 = vector.shape_cast %1 : vector<2x128xf32> to vector<1x2x128xf32>
    %3 = vector.broadcast %2 : vector<1x2x128xf32> to vector<2x2x128xf32>
    %4 = arith.addf %0, %3 : vector<2x2x128xf32>
    %c0_4 = arith.constant 0 : index
    %c0_5 = arith.constant 0 : index
    %c0_6 = arith.constant 0 : index
    %5 = vector.load %arg5[%c0_4, %c0_5, %c0_6] : memref<2x2x128xf32, #tpu.memory_space<vmem>>, vector<2x2x128xf32>
    tpu.vector_store %arg5[%c0_4, %c0_5, %c0_6], %4 {strides = array<i32>} : memref<2x2x128xf32, #tpu.memory_space<vmem>>, vector<2x2x128xf32>,
    return
  }
  func.func @transform_0(%arg0: i32, %arg1: i32, %arg2: memref<1xi32, #tpu.memory_space<smem>>) -> (i32, i32, i32) {
    %c0_i32 = arith.constant 0 : i32
    %c0_i32_0 = arith.constant 0 : i32
    return %arg1, %arg0, %c0_i32 : i32, i32, i32
  }
  func.func @transform_1(%arg0: i32, %arg1: i32, %arg2: memref<1xi32, #tpu.memory_space<smem>>) -> (i32, i32) {
    %c0_i32 = arith.constant 0 : i32
    %c0_i32_0 = arith.constant 0 : i32
    return %arg0, %c0_i32 : i32, i32
  }
  func.func @transform_2(%arg0: i32, %arg1: i32, %arg2: memref<1xi32, #tpu.memory_space<smem>>) -> (i32, i32, i32) {
    %c0_i32 = arith.constant 0 : i32
    %c0_i32_0 = arith.constant 0 : i32
    return %arg1, %arg0, %c0_i32 : i32, i32, i32
  }
}

</mosaic_0001>

<bundles_post_ra>
// kernel: tpu_custom_call.1
= control target key start
LH: loop header
LB: loop body
LE: loop exit
PB: predicated region body
PF: predicated region fallthrough
CT: control target
= control target key end

     0   :  { %9 = vsyncpa [#allocation5], 0  ;;  %s145_s0 = inlined_call_operand.<no memory space> [shape: s32[1], index: 0, kind: input, shape index: {}]   ;;  %s146_s1 = inlined_call_operand.hbm [shape: f32[2,2,128], index: 1, kind: input, shape index: {}]   ;;  %s147_s2 = inlined_call_operand.vmem [shape: f32[2,128], index: 2, kind: input, shape index: {}]   ;;  %s148_s3 = inlined_call_operand.hbm [shape: f32[2,2,128], index: 3, kind: output, shape index: {}]  }
   0x1   :  { %10 = vsyncpa [#allocation6], 0  ;;  %s15_s14 = sshll.u32 %s146_s1, 4  ;;  %s112_s15 = smov [#allocation4]   ;;  %s16_s14 = int_to_ptr.hbm [resolvable:$true] %s15_s14 }
   0x2   :  { %s17_s16 = sshll.u32 %s112_s15, 4  ;;  %s113_s0 = smov 32   ;;  %s18_s16 = int_to_ptr.vmem [resolvable:$true] %s17_s16 }
   0x3   :  { %s114_s17 = smov 2  }
   0x4   :  { %23 = dma.hbm_to_vmem [thread:$0]  %s16_s14, 64, %s18_s16, [#allocation5], %s113_s0, %s113_s0, %s114_s17  }
   0x5   :  { %108 = dma.done.wait [#allocation5], 64  }
   0x6   :  { %109 = vsyncadd [#allocation5], 4294967232  ;;  %s115_s18 = smov [#allocation7]   ;;  %s43_s22 = sshll.u32 %s148_s3, 4  ;;  %v30_v0 = vld [vmem:[#allocation4] sm:$0x3]  ;;  %s44_s22 = int_to_ptr.hbm [resolvable:$true] %s43_s22 }
   0x7   :  { %s41_s19 = sshll.u32 %s115_s18, 4  ;;  %v32_v1 = vld [vmem:[%s147_s2] sm:$0x3]  ;;  %v31_v2 = vld [vmem:[#allocation4 + $0x2] sm:$0x3]  ;;  %s42_s19 = int_to_ptr.vmem [resolvable:$true] %s41_s19 }
   0x8   :  { %v33_v3 = vadd.f32 %v32_v1, %v30_v0  ;;  %v34_v4 = vadd.f32 %v32_v1, %v31_v2 }
   0xa   :  { %35 = vst [vmem:[#allocation7] sm:$0x3] %v33_v3 }
   0xb   :  { %36 = vst [vmem:[#allocation7 + $0x2] sm:$0x3] %v34_v4 }
   0xc   :  { %49 = dma.vmem_to_hbm [thread:$0]  %s42_s19, 64, %s44_s22, [#allocation6], %s113_s0, %s113_s0, %s114_s17  }
   0xd   :  { %110 = dma.done.wait [#allocation6], 64  }
   0xe   :  { %111 = vsyncadd [#allocation6], 4294967232 }
   0xf   :  { %54 = vsyncpa [#allocation5], 1 }
  0x10   :  { %55 = vsyncpa [#allocation6], 1 }

</bundles_post_ra>
